<compile_context>
chip_gen: v7x
topology: tpu7x:2x2x1
jax: 0.10.0
libtpu: 0.0.40
codegen_flags: <defaults>
</compile_context>

<pallas_src>
import functools

import jax
import jax.numpy as jnp
from jax.experimental import pallas as pl
from jax.experimental.pallas import tpu as pltpu


def _round_up(n, m):
    return ((n + m - 1) // m) * m


def dnn_kernel(x_ref, w1_ref, b1_ref, w2_ref, b2_ref, w3_ref, b3_ref, o_ref):
    # fc1 + ReLU  (x already bf16; MXU accumulates in f32; epilogue in f32)
    h1 = jnp.dot(x_ref[...], w1_ref[...], preferred_element_type=jnp.float32)
    h1 = jnp.maximum(h1 + b1_ref[...], 0.0)
    # fc2 + ReLU
    h2 = jnp.dot(h1.astype(jnp.bfloat16), w2_ref[...],
                 preferred_element_type=jnp.float32)
    h2 = jnp.maximum(h2 + b2_ref[...], 0.0)
    # fc3 (no activation)
    h3 = jnp.dot(h2.astype(jnp.bfloat16), w3_ref[...],
                 preferred_element_type=jnp.float32)
    o_ref[...] = (h3 + b3_ref[...]).astype(o_ref.dtype)


def prepare_params(params):
    """Pad (lane-dense N dims only) and cast weights once; reuse across calls.

    Keeps the fc1 contraction dim K = in_size un-padded (x streams un-padded too).
    Zero padding keeps the math exact; padded output columns are sliced off.
    """
    w1, b1, w2, b2, w3, b3 = params
    in_size = w1.shape[0]
    h1_p = _round_up(w1.shape[1], 128)
    h2_p = _round_up(w2.shape[1], 128)
    out_p = _round_up(w3.shape[1], 128)

    pad2 = lambda a, r, c: jnp.pad(a, ((0, r - a.shape[0]), (0, c - a.shape[1])))

    w1_p = pad2(w1, in_size, h1_p).astype(jnp.bfloat16)
    w2_p = pad2(w2, h1_p, h2_p).astype(jnp.bfloat16)
    w3_p = pad2(w3, h2_p, out_p).astype(jnp.bfloat16)
    b1_p = pad2(b1, 1, h1_p).astype(jnp.float32)
    b2_p = pad2(b2, 1, h2_p).astype(jnp.float32)
    b3_p = pad2(b3, 1, out_p).astype(jnp.float32)
    return (w1_p, b1_p, w2_p, b2_p, w3_p, b3_p)


def _choose_tile_b(B):
    b16 = _round_up(max(B, 16), 16)
    if b16 <= 128:
        # Single block: minimal per-step overhead (best on single-TC v5e/v6e).
        return b16
    if b16 <= 2048:
        # At least two grid steps so megacore sharding engages on v7x.
        return _round_up(pl.cdiv(b16, 2), 16)
    # Large batches: 512-row tiles sit in the ~85%-of-HBM-roofline regime and
    # amortize the ~0.35 us/step grid overhead.
    return 512


@functools.partial(jax.jit, static_argnames=("out_size", "tile_b"))
def dnn_forward(x, prepped_params, *, out_size, tile_b=None):
    """Fused 3-layer MLP; batch streamed through a 1-D grid, weights VMEM-resident."""
    w1_p, b1_p, w2_p, b2_p, w3_p, b3_p = prepped_params
    B, in_size = x.shape
    h1_p = w1_p.shape[1]
    h2_p = w2_p.shape[1]
    out_p = w3_p.shape[1]

    if tile_b is None:
        tile_b = _choose_tile_b(B)
    tile_b = max(16, _round_up(int(tile_b), 16))
    b_p = _round_up(B, tile_b)
    n_tiles = b_p // tile_b

    # Only pad the batch rows of x; stream it in bf16 (halves input DMA traffic).
    x_p = jnp.pad(x, ((0, b_p - B), (0, 0))).astype(jnp.bfloat16)

    # Constant index_map => block revisited every step => weights stay VMEM-resident.
    resident = lambda a: pl.BlockSpec(a.shape, lambda i: (0, 0))

    # VMEM budget (double-buffered x/out tiles, resident weights, activation temps).
    vmem_bytes = (
        2 * tile_b * in_size * 2
        + 2 * tile_b * out_p * 4
        + 2 * (w1_p.size + w2_p.size + w3_p.size) * 2
        + 2 * (b1_p.size + b2_p.size + b3_p.size) * 4
        + tile_b * (h1_p + h2_p) * (4 + 2)
    )
    vmem_limit = int(min(max(4 * vmem_bytes, 8 << 20), 48 << 20))

    out_padded = pl.pallas_call(
        dnn_kernel,
        out_shape=jax.ShapeDtypeStruct((b_p, out_p), x.dtype),
        grid=(n_tiles,),
        in_specs=[
            pl.BlockSpec((tile_b, in_size), lambda i: (i, 0)),  # x streams (bf16)
            resident(w1_p), resident(b1_p),
            resident(w2_p), resident(b2_p),
            resident(w3_p), resident(b3_p),
        ],
        out_specs=pl.BlockSpec((tile_b, out_p), lambda i: (i, 0)),
        compiler_params=pltpu.CompilerParams(
            dimension_semantics=("parallel",),   # megacore sharding on v7x
            vmem_limit_bytes=vmem_limit,
        ),
    )(x_p, w1_p, b1_p, w2_p, b2_p, w3_p, b3_p)

    return out_padded[:B, :out_size]


def init_params(key, input_size, output_size, dtype=jnp.float32):
    """Deterministic init matching nn.Linear shapes (weights stored transposed)."""
    ks = jax.random.split(key, 6)

    def linear(kw, kb, fan_in, fan_out):
        bound = 1.0 / jnp.sqrt(fan_in)
        w = jax.random.uniform(kw, (fan_in, fan_out), dtype, -bound, bound)
        b = jax.random.uniform(kb, (1, fan_out), dtype, -bound, bound)
        return w, b

    w1, b1 = linear(ks[0], ks[1], input_size, 128)
    w2, b2 = linear(ks[2], ks[3], 128, 64)
    w3, b3 = linear(ks[4], ks[5], 64, output_size)
    return (w1, b1, w2, b2, w3, b3)


def dnn_reference_f32(x, params):
    w1, b1, w2, b2, w3, b3 = params
    h = jnp.maximum(x @ w1 + b1, 0.0)
    h = jnp.maximum(h @ w2 + b2, 0.0)
    return h @ w3 + b3


def dnn_reference_bf16(x, params):
    """Same bf16-operand / f32-accumulate arithmetic as the kernel."""
    w1, b1, w2, b2, w3, b3 = params
    bf = jnp.bfloat16
    h = jnp.dot(x.astype(bf), w1.astype(bf), preferred_element_type=jnp.float32) + b1
    h = jnp.maximum(h, 0.0)
    h = jnp.dot(h.astype(bf), w2.astype(bf), preferred_element_type=jnp.float32) + b2
    h = jnp.maximum(h, 0.0)
    return jnp.dot(h.astype(bf), w3.astype(bf), preferred_element_type=jnp.float32) + b3


if __name__ == "__main__":
    key = jax.random.PRNGKey(0)
    # Non-multiple-of-tile batch -> exercises row padding and a 2-step streamed grid.
    batch, input_size, output_size = 200, 32, 16

    k_x, k_p = jax.random.split(key)
    x = jax.random.normal(k_x, (batch, input_size), jnp.float32)
    params = init_params(k_p, input_size, output_size)
    prepped = prepare_params(params)   # pad/cast weights ONCE, outside the forward

    out = dnn_forward(x, prepped, out_size=output_size)
    out = jax.block_until_ready(out)
    assert out.shape == (batch, output_size)

    ref_bf16 = dnn_reference_bf16(x, params)   # exact arithmetic-match target
    ref_f32 = dnn_reference_f32(x, params)     # module-semantics (f32) target
    assert jnp.allclose(out, ref_bf16, atol=2e-3, rtol=2e-3), "mismatch vs bf16-MXU reference"
    assert jnp.allclose(out, ref_f32, atol=5e-2, rtol=5e-2), "mismatch vs f32 reference"

    print("KERNEL_OK")
</pallas_src>

<mosaic_0001>
module attributes {stable_mosaic.version = 11 : i64} {
  func.func @dnn_kernel(%arg0: i32, %arg1: memref<112x32xbf16, #tpu.memory_space<vmem>>, %arg2: memref<32x128xbf16, #tpu.memory_space<vmem>>, %arg3: memref<1x128xf32, #tpu.memory_space<vmem>>, %arg4: memref<128x128xbf16, #tpu.memory_space<vmem>>, %arg5: memref<1x128xf32, #tpu.memory_space<vmem>>, %arg6: memref<128x128xbf16, #tpu.memory_space<vmem>>, %arg7: memref<1x128xf32, #tpu.memory_space<vmem>>, %arg8: memref<112x128xf32, #tpu.memory_space<vmem>>) attributes {dimension_semantics = [#tpu.dimension_semantics<parallel>], iteration_bounds = array<i64: 2>, scalar_prefetch = 0 : i64, scratch_operands = 0 : i64, tpu.core_type = #tpu.core_type<tc>, window_params = [{transform_indices = @transform_0, window_bounds = array<i64: 112, 32>}, {pipeline_mode = #tpu.pipeline_mode<synchronous>, transform_indices = @transform_1, window_bounds = array<i64: 32, 128>}, {pipeline_mode = #tpu.pipeline_mode<synchronous>, transform_indices = @transform_2, window_bounds = array<i64: 1, 128>}, {pipeline_mode = #tpu.pipeline_mode<synchronous>, transform_indices = @transform_3, window_bounds = array<i64: 128, 128>}, {pipeline_mode = #tpu.pipeline_mode<synchronous>, transform_indices = @transform_4, window_bounds = array<i64: 1, 128>}, {pipeline_mode = #tpu.pipeline_mode<synchronous>, transform_indices = @transform_5, window_bounds = array<i64: 128, 128>}, {pipeline_mode = #tpu.pipeline_mode<synchronous>, transform_indices = @transform_6, window_bounds = array<i64: 1, 128>}, {transform_indices = @transform_7, window_bounds = array<i64: 112, 128>}]} {
    %c0 = arith.constant 0 : index
    %c0_0 = arith.constant 0 : index
    %0 = vector.load %arg1[%c0, %c0_0] : memref<112x32xbf16, #tpu.memory_space<vmem>>, vector<112x32xbf16>
    %c0_1 = arith.constant 0 : index
    %c0_2 = arith.constant 0 : index
    %1 = vector.load %arg2[%c0_1, %c0_2] : memref<32x128xbf16, #tpu.memory_space<vmem>>, vector<32x128xbf16>
    %cst = arith.constant dense<0.000000e+00> : vector<112x128xf32>
    %2 = tpu.matmul %0, %1, %cst {dimension_numbers = #tpu.dot_dimension_numbers<[1], [0], [0], [1], [0, 0, 1, 1], [], []>} : vector<112x32xbf16>, vector<32x128xbf16>, vector<112x128xf32> -> vector<112x128xf32>
    %c0_3 = arith.constant 0 : index
    %c0_4 = arith.constant 0 : index
    %3 = vector.load %arg3[%c0_3, %c0_4] : memref<1x128xf32, #tpu.memory_space<vmem>>, vector<1x128xf32>
    %4 = vector.broadcast %3 : vector<1x128xf32> to vector<112x128xf32>
    %5 = arith.addf %2, %4 : vector<112x128xf32>
    %cst_5 = arith.constant 0.000000e+00 : f32
    %6 = vector.broadcast %cst_5 : f32 to vector<112x128xf32>
    %7 = arith.maximumf %5, %6 : vector<112x128xf32>
    %8 = arith.truncf %7 : vector<112x128xf32> to vector<112x128xbf16>
    %c0_6 = arith.constant 0 : index
    %c0_7 = arith.constant 0 : index
    %9 = vector.load %arg4[%c0_6, %c0_7] : memref<128x128xbf16, #tpu.memory_space<vmem>>, vector<128x128xbf16>
    %cst_8 = arith.constant dense<0.000000e+00> : vector<112x128xf32>
    %10 = tpu.matmul %8, %9, %cst_8 {dimension_numbers = #tpu.dot_dimension_numbers<[1], [0], [0], [1], [0, 0, 1, 1], [], []>} : vector<112x128xbf16>, vector<128x128xbf16>, vector<112x128xf32> -> vector<112x128xf32>
    %c0_9 = arith.constant 0 : index
    %c0_10 = arith.constant 0 : index
    %11 = vector.load %arg5[%c0_9, %c0_10] : memref<1x128xf32, #tpu.memory_space<vmem>>, vector<1x128xf32>
    %12 = vector.broadcast %11 : vector<1x128xf32> to vector<112x128xf32>
    %13 = arith.addf %10, %12 : vector<112x128xf32>
    %cst_11 = arith.constant 0.000000e+00 : f32
    %14 = vector.broadcast %cst_11 : f32 to vector<112x128xf32>
    %15 = arith.maximumf %13, %14 : vector<112x128xf32>
    %16 = arith.truncf %15 : vector<112x128xf32> to vector<112x128xbf16>
    %c0_12 = arith.constant 0 : index
    %c0_13 = arith.constant 0 : index
    %17 = vector.load %arg6[%c0_12, %c0_13] : memref<128x128xbf16, #tpu.memory_space<vmem>>, vector<128x128xbf16>
    %cst_14 = arith.constant dense<0.000000e+00> : vector<112x128xf32>
    %18 = tpu.matmul %16, %17, %cst_14 {dimension_numbers = #tpu.dot_dimension_numbers<[1], [0], [0], [1], [0, 0, 1, 1], [], []>} : vector<112x128xbf16>, vector<128x128xbf16>, vector<112x128xf32> -> vector<112x128xf32>
    %c0_15 = arith.constant 0 : index
    %c0_16 = arith.constant 0 : index
    %19 = vector.load %arg7[%c0_15, %c0_16] : memref<1x128xf32, #tpu.memory_space<vmem>>, vector<1x128xf32>
    %20 = vector.broadcast %19 : vector<1x128xf32> to vector<112x128xf32>
    %21 = arith.addf %18, %20 : vector<112x128xf32>
    %c0_17 = arith.constant 0 : index
    %c0_18 = arith.constant 0 : index
    %22 = vector.load %arg8[%c0_17, %c0_18] : memref<112x128xf32, #tpu.memory_space<vmem>>, vector<112x128xf32>
    tpu.vector_store %arg8[%c0_17, %c0_18], %21 {strides = array<i32>} : memref<112x128xf32, #tpu.memory_space<vmem>>, vector<112x128xf32>,
    return
  }
  func.func @transform_0(%arg0: i32) -> (i32, i32) {
    %c0_i32 = arith.constant 0 : i32
    %c0_i32_0 = arith.constant 0 : i32
    return %arg0, %c0_i32 : i32, i32
  }
  func.func @transform_1(%arg0: i32) -> (i32, i32) {
    %c0_i32 = arith.constant 0 : i32
    %c0_i32_0 = arith.constant 0 : i32
    %c0_i32_1 = arith.constant 0 : i32
    return %c0_i32, %c0_i32_0 : i32, i32
  }
  func.func @transform_2(%arg0: i32) -> (i32, i32) {
    %c0_i32 = arith.constant 0 : i32
    %c0_i32_0 = arith.constant 0 : i32
    %c0_i32_1 = arith.constant 0 : i32
    return %c0_i32, %c0_i32_0 : i32, i32
  }
  func.func @transform_3(%arg0: i32) -> (i32, i32) {
    %c0_i32 = arith.constant 0 : i32
    %c0_i32_0 = arith.constant 0 : i32
    %c0_i32_1 = arith.constant 0 : i32
    return %c0_i32, %c0_i32_0 : i32, i32
  }
  func.func @transform_4(%arg0: i32) -> (i32, i32) {
    %c0_i32 = arith.constant 0 : i32
    %c0_i32_0 = arith.constant 0 : i32
    %c0_i32_1 = arith.constant 0 : i32
    return %c0_i32, %c0_i32_0 : i32, i32
  }
  func.func @transform_5(%arg0: i32) -> (i32, i32) {
    %c0_i32 = arith.constant 0 : i32
    %c0_i32_0 = arith.constant 0 : i32
    %c0_i32_1 = arith.constant 0 : i32
    return %c0_i32, %c0_i32_0 : i32, i32
  }
  func.func @transform_6(%arg0: i32) -> (i32, i32) {
    %c0_i32 = arith.constant 0 : i32
    %c0_i32_0 = arith.constant 0 : i32
    %c0_i32_1 = arith.constant 0 : i32
    return %c0_i32, %c0_i32_0 : i32, i32
  }
  func.func @transform_7(%arg0: i32) -> (i32, i32) {
    %c0_i32 = arith.constant 0 : i32
    %c0_i32_0 = arith.constant 0 : i32
    return %arg0, %c0_i32 : i32, i32
  }
}

</mosaic_0001>

<bundles_post_ra>
// kernel: dnn_forward.1
= control target key start
LH: loop header
LB: loop body
LE: loop exit
PB: predicated region body
PF: predicated region fallthrough
CT: control target
= control target key end

     0   :  { %s1190_s24 = smov 0   ;;  %s1391_s0 = inlined_call_operand.vmem [shape: bf16[224,32], index: 0, kind: input, shape index: {}]   ;;  %s1392_s1 = inlined_call_operand.vmem [shape: bf16[32,128], index: 1, kind: input, shape index: {}]   ;;  %s1393_s2 = inlined_call_operand.vmem [shape: f32[1,128], index: 2, kind: input, shape index: {}]   ;;  %s1394_s3 = inlined_call_operand.vmem [shape: bf16[128,128], index: 3, kind: input, shape index: {}]   ;;  %s1395_s4 = inlined_call_operand.vmem [shape: f32[1,128], index: 4, kind: input, shape index: {}]   ;;  %s1396_s5 = inlined_call_operand.vmem [shape: bf16[128,128], index: 5, kind: input, shape index: {}]   ;;  %s1397_s6 = inlined_call_operand.vmem [shape: f32[1,128], index: 6, kind: input, shape index: {}]   ;;  %s1398_s7 = inlined_call_operand.vmem [shape: f32[224,128], index: 7, kind: output, shape index: {}]  }
   0x1 LB: > { %s898_s25 = sadd.s32 4294967295, %s1146_s24   ;;  %p902_p0 = scmp.ge.s32.totalorder %s1146_s24, 1  ;;  %s1146_s24 = sphi %s1190_s24, %s17_s24  }
   0x2   : > { %p238_p1 = scmp.lt.s32.totalorder %s1146_s24, 3 }
   0x4   : > { %p239_p2 = pnand %p902_p0, %p238_p1 }
   0x5   : > { %v1115_v0 = vld [vmem:[%s1392_s1] sm:$0xff] (!%p239_p2)   ;;  %v1148_v1 = vmov (!%p239_p2), 0.0   ;;  %v1116_v2 = vld [vmem:[%s1392_s1 + $0x8] sm:$0xff] (!%p239_p2)   ;;  %vm1149_vm0 = vmmov (!%p239_p2), 0   ;;  %s270_s30 = smul.u32 (!%p239_p2), 14, %s898_s25  ;;  %vm355_vm1 = vcmask (!%p239_p2), 261120  }
   0x6   : > { %242 = sbr.rel (%p239_p2) target bundleno = 722 (0x2d2), region = 48  ;;  %981 = vmatprep.subr.bf16.mxu0 (!%p239_p2), %v1148_v1  ;;  %1101 = vmatprep.subr.bf16.mxu1 (!%p239_p2), %v1148_v1  ;;  %v1124_v4 = vld [vmem:[%s1394_s3] sm:$0xff] (!%p239_p2)   ;;  %v1125_v6 = vld [vmem:[%s1394_s3 + $0x8] sm:$0xff] (!%p239_p2)   ;;  %v1126_v9 = vld [vmem:[%s1394_s3 + $0x10] sm:$0xff] (!%p239_p2)  }
   0x7   : > { %982 = vmatpush3.bf16.msra.mxu0 (!%p239_p2), %v1115_v0  ;;  %985 = vmatprep.mubr.msk.bf16.mxu0 (!%p239_p2), %vm1149_vm0, %v1148_v1  ;;  %p271_p3 = scmp.lt.s32.totalorder (!%p239_p2), %s270_s30, 27  ;;  %v1127_v11 = vld [vmem:[%s1394_s3 + $0x18] sm:$0xff] (!%p239_p2)   ;;  %v1128_v13 = vld [vmem:[%s1394_s3 + $0x20] sm:$0xff] (!%p239_p2)   ;;  %v1129_v15 = vld [vmem:[%s1394_s3 + $0x28] sm:$0xff] (!%p239_p2)  }
   0x8   : > { %983 = vmatprep.subr.bf16.mxu0 (!%p239_p2), %v1148_v1  ;;  %1103 = vmatpush3.bf16.msra.mxu1 (!%p239_p2), %v1115_v0  ;;  %v1130_v16 = vld [vmem:[%s1394_s3 + $0x30] sm:$0xff] (!%p239_p2)   ;;  %v1131_v17 = vld [vmem:[%s1394_s3 + $0x38] sm:$0xff] (!%p239_p2)   ;;  %v1132_v18 = vld [vmem:[%s1396_s5] sm:$0xff] (!%p239_p2)  }
   0x9   : > { %1102 = vmatprep.subr.bf16.mxu1 (!%p239_p2), %v1148_v1  ;;  %1001 = vmatprep.mubr.msk.bf16.mxu1 (!%p239_p2), %vm1149_vm0, %v1148_v1  ;;  %v1133_v19 = vld [vmem:[%s1396_s5 + $0x8] sm:$0xff] (!%p239_p2)   ;;  %v1134_v20 = vld [vmem:[%s1396_s5 + $0x10] sm:$0xff] (!%p239_p2)   ;;  %v1135_v21 = vld [vmem:[%s1396_s5 + $0x18] sm:$0xff] (!%p239_p2)  }
   0xa   : > { %v1136_v22 = vld [vmem:[%s1396_s5 + $0x20] sm:$0xff] (!%p239_p2)   ;;  %v1137_v23 = vld [vmem:[%s1396_s5 + $0x28] sm:$0xff] (!%p239_p2)  }
   0xb   : > { %984 = vmatpush3.bf16.msra.mxu0 (!%p239_p2), %v1116_v2  ;;  %v1299_v24 = vld [vmem:[%s1393_s2] ss:$0 sm:$0xff] (!%p239_p2) }
   0xc   : > { %1104 = vmatpush3.bf16.msra.mxu1 (!%p239_p2), %v1116_v2  ;;  %1057 = vmatprep.subr.bf16.mxu0 (!%p239_p2), %v1148_v1 }
   0xd   : > { %s1400_s30 = smov (!%p271_p3, %s270_s30), 27  ;;  %1013 = vmatprep.subr.bf16.mxu1 %v1148_v1 }
   0xe   : > { %s903_s8 = sshll.u32 %s1400_s30, 2  ;;  %s904_s28 = sshll.u32 %s1400_s30, 3 }
   0xf   : > { %s274_s11 = scalar_lea.vmem %s1391_s0, %s903_s8 }
  0x10   : > { %v1117_v3 = vld [vmem:[%s274_s11] sm:$0xff]   ;;  %v1118_v7 = vld [vmem:[%s274_s11 + $0x8] sm:$0xff]   ;;  %v1119_v10 = vld [vmem:[%s274_s11 + $0x10] sm:$0xff]  }
  0x11   : > { %986 = vmatmul.mubr.msk.bf16.vlgmr.msra.gmra.mrb[0].mxu0 %vm355_vm1, %v1117_v3  ;;  %v1121_v5 = vld [vmem:[%s274_s11 + $0x20] sm:$0xff]   ;;  %v1122_v8 = vld [vmem:[%s274_s11 + $0x28] sm:$0xff]   ;;  %v1123_v12 = vld [vmem:[%s274_s11 + $0x30] sm:$0xff]  }
  0x12   : > { %989 = vmatprep.mubr.msk.bf16.mxu0 %vm1149_vm0, %v1148_v1  ;;  %1002 = vmatmul.mubr.msk.bf16.vlgmr.msra.gmra.mrb[0].mxu1 %vm355_vm1, %v1121_v5  ;;  %v1120_v14 = vld [vmem:[%s274_s11 + $0x18] sm:$0xff]   ;;  %s1372_s11 = scalar_lea.vmem %s1398_s7, %s904_s28 }
  0x13   : > { %1005 = vmatprep.mubr.msk.bf16.mxu1 %vm1149_vm0, %v1148_v1  ;;  %1014 = vmatpush3.bf16.msra.mxu1 %v1124_v4 }
  0x14   : > { %1015 = vmatprep.subr.bf16.mxu1 %v1148_v1  ;;  %1058 = vmatpush3.bf16.msra.mxu0 %v1132_v18 }
  0x15   : > { %1059 = vmatprep.subr.bf16.mxu0 %v1148_v1 }
  0x17   : > { %1016 = vmatpush3.bf16.msra.mxu1 %v1125_v6 }
  0x18   : > { %1017 = vmatprep.subr.bf16.mxu1 %v1148_v1  ;;  %1060 = vmatpush3.bf16.msra.mxu0 %v1133_v19 }
  0x19   : > { %990 = vmatmul.mubr.msk.bf16.gmra.mrb[4].mxu0 %vm355_vm1, %v1118_v7  ;;  %1061 = vmatprep.subr.bf16.mxu0 %v1148_v1 }
  0x1a   : > { %993 = vmatprep.mubr.msk.bf16.mxu0 %vm1149_vm0, %v1148_v1  ;;  %1006 = vmatmul.mubr.msk.bf16.gmra.mrb[4].mxu1 %vm355_vm1, %v1122_v8 }
  0x1b   : > { %1009 = vmatprep.mubr.msk.bf16.mxu1 %vm1149_vm0, %v1148_v1  ;;  %1018 = vmatpush3.bf16.msra.mxu1 %v1126_v9 }
  0x1c   : > { %1019 = vmatprep.subr.bf16.mxu1 %v1148_v1  ;;  %1062 = vmatpush3.bf16.msra.mxu0 %v1134_v20 }
  0x1d   : > { %1063 = vmatprep.subr.bf16.mxu0 %v1148_v1 }
  0x1f   : > { %1020 = vmatpush3.bf16.msra.mxu1 %v1127_v11 }
  0x20   : > { %1021 = vmatprep.subr.bf16.mxu1 %v1148_v1  ;;  %1064 = vmatpush3.bf16.msra.mxu0 %v1135_v21 }
  0x21   : > { %994 = vmatmul.mubr.msk.bf16.gmra.mrb[8].mxu0 %vm355_vm1, %v1119_v10  ;;  %1065 = vmatprep.subr.bf16.mxu0 %v1148_v1 }
  0x22   : > { %997 = vmatprep.mubr.msk.bf16.mxu0 %vm1149_vm0, %v1148_v1  ;;  %1010 = vmatmul.mubr.msk.bf16.gmra.mrb[8].mxu1 %vm355_vm1, %v1123_v12 }
  0x23   : > { %1022 = vmatpush3.bf16.msra.mxu1 %v1128_v13  ;;  %1029 = vmatprep.mubr.msk.bf16.mxu1 %vm1149_vm0, %v1148_v1 }
  0x24   : > { %1023 = vmatprep.subr.bf16.mxu1 %v1148_v1  ;;  %1066 = vmatpush3.bf16.msra.mxu0 %v1136_v22 }
  0x25   : > { %1067 = vmatprep.subr.bf16.mxu0 %v1148_v1 }
  0x27   : > { %1024 = vmatpush3.bf16.msra.mxu1 %v1129_v15 }
  0x28   : > { %1025 = vmatprep.subr.bf16.mxu1 %v1148_v1  ;;  %1068 = vmatpush3.bf16.msra.mxu0 %v1137_v23 }
  0x29   : > { %998 = vmatmul.mubr.msk.bf16.gmra.mrb[12].mxu0 %vm355_vm1, %v1120_v14  ;;  %1069 = vmatprep.subr.bf16.mxu0 %v1148_v1 }
  0x2a   : > { %1073 = vmatprep.mubr.msk.bf16.mxu0 %vm1149_vm0, %v1148_v1 }
  0x2b   : > { %1026 = vmatpush3.bf16.msra.mxu1 %v1130_v16 }
  0x2c   : > { %1027 = vmatprep.subr.bf16.mxu1 %v1148_v1 }
  0x2f   : > { %1028 = vmatpush3.bf16.msra.mxu1 %v1131_v17 }
  0xe4   : > { %v411_v25 = vpop.f32.mrb[0].mxu0 }
  0xe5   : > { %v412_v26 = vadd.f32 %v1299_v24, %v411_v25  ;;  %v987_v27 = vpop.f32.mrb[1].mxu0  ;;  %v443_v31 = vpop.f32.mrb[0].mxu1 }
  0xe6   : > { %v414_v28 = vpop.f32.mrb[2].mxu0  ;;  %v444_v34 = vadd.f32 %v1299_v24, %v443_v31  ;;  %v1003_v35 = vpop.f32.mrb[1].mxu1  ;;  %v1337_v27 = vld [vmem:[%s1395_s4] ss:$0 sm:$0xff] }
  0xe7   : > { %v415_v29 = vadd.f32 %v1299_v24, %v414_v28  ;;  %v988_v30 = vpop.f32.mrb[3].mxu0  ;;  %v466_v32 = vmax.f32 %v412_v26, 0.0  ;;  %v446_v36 = vpop.f32.mrb[2].mxu1  ;;  %v1139_v26 = vld [vmem:[%s1396_s5 + $0x38] sm:$0xff]  }
  0xe8   : > { %v474_v38 = vmax.f32 %v444_v34, 0.0  ;;  %v447_v39 = vadd.f32 %v1299_v24, %v446_v36  ;;  %v1004_v40 = vpop.f32.mrb[3].mxu1 }
  0xe9   : > { %v467_v33 = vmax.f32 %v415_v29, 0.0 }
  0xea   : > { %v475_v44 = vmax.f32 %v447_v39, 0.0 }
  0xeb   : > { %v480_v37 = vpack.c.bf16 %v467_v33, %v466_v32 }
  0xec   : > { %v419_v41 = vpop.f32.mrb[4].mxu0  ;;  %v484_v48 = vpack.c.bf16 %v475_v44, %v474_v38 }
  0xed   : > { %v420_v42 = vadd.f32 %v1299_v24, %v419_v41  ;;  %v991_v43 = vpop.f32.mrb[5].mxu0  ;;  %1030 = vmatmul.mubr.bf16.vlgmr.msra.gmra.mrb[12].mxu1 %v480_v37  ;;  %v451_v49 = vpop.f32.mrb[4].mxu1 }
  0xee   : > { %v422_v45 = vpop.f32.mrb[6].mxu0  ;;  %1033 = vmatprep.mubr.msk.bf16.mxu1 %vm1149_vm0, %v1148_v1  ;;  %v452_v52 = vadd.f32 %v1299_v24, %v451_v49  ;;  %v1007_v53 = vpop.f32.mrb[5].mxu1 }
  0xef   : > { %v423_v46 = vadd.f32 %v1299_v24, %v422_v45  ;;  %v992_v47 = vpop.f32.mrb[7].mxu0  ;;  %v468_v50 = vmax.f32 %v420_v42, 0.0  ;;  %v454_v54 = vpop.f32.mrb[6].mxu1 }
  0xf0   : > { %v476_v56 = vmax.f32 %v452_v52, 0.0  ;;  %v455_v57 = vadd.f32 %v1299_v24, %v454_v54  ;;  %v1008_v58 = vpop.f32.mrb[7].mxu1 }
  0xf1   : > { %v469_v51 = vmax.f32 %v423_v46, 0.0 }
  0xf2   : > { %v477_v62 = vmax.f32 %v455_v57, 0.0 }
  0xf3   : > { %v481_v55 = vpack.c.bf16 %v469_v51, %v468_v50 }
  0xf4   : > { %v427_v59 = vpop.f32.mrb[8].mxu0  ;;  %v485_v3 = vpack.c.bf16 %v477_v62, %v476_v56 }
  0xf5   : > { %v428_v60 = vadd.f32 %v1299_v24, %v427_v59  ;;  %v995_v61 = vpop.f32.mrb[9].mxu0  ;;  %1034 = vmatmul.mubr.bf16.gmra.mrb[16].mxu1 %v481_v55  ;;  %v459_v4 = vpop.f32.mrb[8].mxu1 }
  0xf6   : > { %v430_v63 = vpop.f32.mrb[10].mxu0  ;;  %1037 = vmatprep.mubr.msk.bf16.mxu1 %vm1149_vm0, %v1148_v1  ;;  %v460_v7 = vadd.f32 %v1299_v24, %v459_v4  ;;  %v1011_v8 = vpop.f32.mrb[9].mxu1 }
  0xf7   : > { %v431_v0 = vadd.f32 %v1299_v24, %v430_v63  ;;  %v996_v2 = vpop.f32.mrb[11].mxu0  ;;  %v470_v5 = vmax.f32 %v428_v60, 0.0  ;;  %v462_v9 = vpop.f32.mrb[10].mxu1 }
  0xf8   : > { %v478_v11 = vmax.f32 %v460_v7, 0.0  ;;  %v463_v12 = vadd.f32 %v1299_v24, %v462_v9  ;;  %v1012_v13 = vpop.f32.mrb[11].mxu1 }
  0xf9   : > { %v471_v6 = vmax.f32 %v431_v0, 0.0 }
  0xfa   : > { %v479_v17 = vmax.f32 %v463_v12, 0.0 }
  0xfb   : > { %v482_v10 = vpack.c.bf16 %v471_v6, %v470_v5 }
  0xfc   : > { %v435_v14 = vpop.f32.mrb[12].mxu0  ;;  %v486_v21 = vpack.c.bf16 %v479_v17, %v478_v11 }
  0xfd   : > { %v436_v15 = vadd.f32 %v1299_v24, %v435_v14  ;;  %v999_v16 = vpop.f32.mrb[13].mxu0  ;;  %1038 = vmatmul.mubr.bf16.gmra.mrb[20].mxu1 %v482_v10 }
  0xfe   : > { %v438_v18 = vpop.f32.mrb[14].mxu0  ;;  %1041 = vmatprep.mubr.msk.bf16.mxu1 %vm1149_vm0, %v1148_v1 }
  0xff   : > { %v439_v19 = vadd.f32 %v1299_v24, %v438_v18  ;;  %v1000_v20 = vpop.f32.mrb[15].mxu0  ;;  %v472_v22 = vmax.f32 %v436_v15, 0.0  ;;  %v1138_v24 = vld [vmem:[%s1396_s5 + $0x30] sm:$0xff]  }
 0x100   : > { %1070 = vmatpush3.bf16.msra.mxu0 %v1138_v24 }
 0x101   : > { %v473_v23 = vmax.f32 %v439_v19, 0.0  ;;  %1071 = vmatprep.subr.bf16.mxu0 %v1148_v1 }
 0x103   : > { %v483_v25 = vpack.c.bf16 %v473_v23, %v472_v22 }
 0x104   : > { %1072 = vmatpush3.bf16.msra.mxu0 %v1139_v26 }
 0x105   : > { %1042 = vmatmul.mubr.bf16.gmra.mrb[24].mxu1 %v483_v25 }
 0x106   : > { %1045 = vmatprep.mubr.msk.bf16.mxu1 %vm1149_vm0, %v1148_v1 }
 0x10d   : > { %1046 = vmatmul.mubr.bf16.gmra.mrb[28].mxu1 %v484_v48 }
 0x10e   : > { %1049 = vmatprep.mubr.msk.bf16.mxu1 %vm1149_vm0, %v1148_v1 }
 0x115   : > { %1050 = vmatmul.mubr.bf16.gmra.mrb[32].mxu1 %v485_v3 }
 0x116   : > { %1053 = vmatprep.mubr.msk.bf16.mxu1 %vm1149_vm0, %v1148_v1 }
 0x11d   : > { %1054 = vmatmul.mubr.bf16.gmra.mrb[36].mxu1 %v486_v21 }
 0x1c0   : > { %v592_v28 = vpop.f32.mrb[12].mxu1 }
 0x1c1   : > { %v593_v29 = vadd.f32 %v1337_v27, %v592_v28  ;;  %v1031_v30 = vpop.f32.mrb[13].mxu1 }
 0x1c2   : > { %v595_v31 = vpop.f32.mrb[14].mxu1 }
 0x1c3   : > { %v596_v32 = vadd.f32 %v1337_v27, %v595_v31  ;;  %v1032_v33 = vpop.f32.mrb[15].mxu1  ;;  %v647_v34 = vmax.f32 %v593_v29, 0.0  ;;  %v931_v29 = vld [vmem:[%s1397_s6] ss:$0 sm:$0xff] }
 0x1c5   : > { %v648_v35 = vmax.f32 %v596_v32, 0.0 }
 0x1c7   : > { %v661_v36 = vpack.c.bf16 %v648_v35, %v647_v34 }
 0x1c8   : > { %v600_v37 = vpop.f32.mrb[16].mxu1 }
 0x1c9   : > { %v601_v38 = vadd.f32 %v1337_v27, %v600_v37  ;;  %v1035_v39 = vpop.f32.mrb[17].mxu1  ;;  %1074 = vmatmul.mubr.bf16.vlgmr.msra.gmra.mrb[16].mxu0 %v661_v36 }
 0x1ca   : > { %v603_v40 = vpop.f32.mrb[18].mxu1  ;;  %1077 = vmatprep.mubr.msk.bf16.mxu0 %vm1149_vm0, %v1148_v1 }
 0x1cb   : > { %v604_v41 = vadd.f32 %v1337_v27, %v603_v40  ;;  %v1036_v42 = vpop.f32.mrb[19].mxu1  ;;  %v649_v43 = vmax.f32 %v601_v38, 0.0 }
 0x1cd   : > { %v650_v44 = vmax.f32 %v604_v41, 0.0 }
 0x1cf   : > { %v662_v45 = vpack.c.bf16 %v650_v44, %v649_v43 }
 0x1d0   : > { %v608_v46 = vpop.f32.mrb[20].mxu1 }
 0x1d1   : > { %v609_v47 = vadd.f32 %v1337_v27, %v608_v46  ;;  %v1039_v48 = vpop.f32.mrb[21].mxu1  ;;  %1078 = vmatmul.mubr.bf16.gmra.mrb[20].mxu0 %v662_v45 }
 0x1d2   : > { %v611_v49 = vpop.f32.mrb[22].mxu1  ;;  %1081 = vmatprep.mubr.msk.bf16.mxu0 %vm1149_vm0, %v1148_v1 }
 0x1d3   : > { %v612_v50 = vadd.f32 %v1337_v27, %v611_v49  ;;  %v1040_v51 = vpop.f32.mrb[23].mxu1  ;;  %v651_v52 = vmax.f32 %v609_v47, 0.0 }
 0x1d5   : > { %v652_v53 = vmax.f32 %v612_v50, 0.0 }
 0x1d7   : > { %v663_v54 = vpack.c.bf16 %v652_v53, %v651_v52 }
 0x1d8   : > { %v616_v55 = vpop.f32.mrb[24].mxu1 }
 0x1d9   : > { %v617_v56 = vadd.f32 %v1337_v27, %v616_v55  ;;  %v1043_v57 = vpop.f32.mrb[25].mxu1  ;;  %1082 = vmatmul.mubr.bf16.gmra.mrb[24].mxu0 %v663_v54 }
 0x1da   : > { %v619_v58 = vpop.f32.mrb[26].mxu1  ;;  %1085 = vmatprep.mubr.msk.bf16.mxu0 %vm1149_vm0, %v1148_v1 }
 0x1db   : > { %v620_v59 = vadd.f32 %v1337_v27, %v619_v58  ;;  %v1044_v60 = vpop.f32.mrb[27].mxu1  ;;  %v653_v61 = vmax.f32 %v617_v56, 0.0 }
 0x1dd   : > { %v654_v62 = vmax.f32 %v620_v59, 0.0 }
 0x1df   : > { %v664_v63 = vpack.c.bf16 %v654_v62, %v653_v61 }
 0x1e0   : > { %v624_v0 = vpop.f32.mrb[28].mxu1 }
 0x1e1   : > { %v625_v2 = vadd.f32 %v1337_v27, %v624_v0  ;;  %v1047_v3 = vpop.f32.mrb[29].mxu1  ;;  %1086 = vmatmul.mubr.bf16.gmra.mrb[28].mxu0 %v664_v63 }
 0x1e2   : > { %v627_v4 = vpop.f32.mrb[30].mxu1  ;;  %1089 = vmatprep.mubr.msk.bf16.mxu0 %vm1149_vm0, %v1148_v1 }
 0x1e3   : > { %v628_v5 = vadd.f32 %v1337_v27, %v627_v4  ;;  %v1048_v6 = vpop.f32.mrb[31].mxu1  ;;  %v655_v7 = vmax.f32 %v625_v2, 0.0 }
 0x1e5   : > { %v656_v8 = vmax.f32 %v628_v5, 0.0 }
 0x1e7   : > { %v665_v9 = vpack.c.bf16 %v656_v8, %v655_v7 }
 0x1e8   : > { %v632_v10 = vpop.f32.mrb[32].mxu1 }
 0x1e9   : > { %v633_v11 = vadd.f32 %v1337_v27, %v632_v10  ;;  %v1051_v12 = vpop.f32.mrb[33].mxu1  ;;  %1090 = vmatmul.mubr.bf16.gmra.mrb[32].mxu0 %v665_v9 }
 0x1ea   : > { %v635_v13 = vpop.f32.mrb[34].mxu1  ;;  %1093 = vmatprep.mubr.msk.bf16.mxu0 %vm1149_vm0, %v1148_v1 }
 0x1eb   : > { %v636_v14 = vadd.f32 %v1337_v27, %v635_v13  ;;  %v1052_v15 = vpop.f32.mrb[35].mxu1  ;;  %v657_v16 = vmax.f32 %v633_v11, 0.0 }
 0x1ed   : > { %v658_v17 = vmax.f32 %v636_v14, 0.0 }
 0x1ef   : > { %v666_v18 = vpack.c.bf16 %v658_v17, %v657_v16 }
 0x1f0   : > { %v640_v19 = vpop.f32.mrb[36].mxu1 }
 0x1f1   : > { %v641_v20 = vadd.f32 %v1337_v27, %v640_v19  ;;  %v1055_v21 = vpop.f32.mrb[37].mxu1  ;;  %1094 = vmatmul.mubr.bf16.gmra.mrb[36].mxu0 %v666_v18 }
 0x1f2   : > { %v643_v22 = vpop.f32.mrb[38].mxu1  ;;  %1097 = vmatprep.mubr.msk.bf16.mxu0 %vm1149_vm0, %v1148_v1 }
 0x1f3   : > { %v644_v23 = vadd.f32 %v1337_v27, %v643_v22  ;;  %v1056_v25 = vpop.f32.mrb[39].mxu1  ;;  %v659_v24 = vmax.f32 %v641_v20, 0.0 }
 0x1f5   : > { %v660_v26 = vmax.f32 %v644_v23, 0.0 }
 0x1f7   : > { %v667_v28 = vpack.c.bf16 %v660_v26, %v659_v24 }
 0x1f9   : > { %1098 = vmatmul.mubr.bf16.gmra.mrb[40].mxu0 %v667_v28 }
 0x29c   : > { %v773_v1 = vpop.f32.mrb[16].mxu0 }
 0x29d   : > { %v774_v27 = vadd.f32 %v931_v29, %v773_v1  ;;  %v1075_v30 = vpop.f32.mrb[17].mxu0 }
 0x29e   : > { %v776_v31 = vpop.f32.mrb[18].mxu0 }
 0x29f   : > { %828 = vst [vmem:[%s1372_s11] sm:$0xff] %v774_v27  ;;  %v777_v32 = vadd.f32 %v931_v29, %v776_v31  ;;  %v1076_v33 = vpop.f32.mrb[19].mxu0 }
 0x2a1   : > { %829 = vst [vmem:[%s1372_s11 + $0x8] sm:$0xff] %v777_v32 }
 0x2a4   : > { %v781_v34 = vpop.f32.mrb[20].mxu0 }
 0x2a5   : > { %v782_v35 = vadd.f32 %v931_v29, %v781_v34  ;;  %v1079_v36 = vpop.f32.mrb[21].mxu0 }
 0x2a6   : > { %v784_v37 = vpop.f32.mrb[22].mxu0 }
 0x2a7   : > { %830 = vst [vmem:[%s1372_s11 + $0x10] sm:$0xff] %v782_v35  ;;  %v785_v38 = vadd.f32 %v931_v29, %v784_v37  ;;  %v1080_v39 = vpop.f32.mrb[23].mxu0 }
 0x2a9   : > { %831 = vst [vmem:[%s1372_s11 + $0x18] sm:$0xff] %v785_v38 }
 0x2ac   : > { %v789_v40 = vpop.f32.mrb[24].mxu0 }
 0x2ad   : > { %v790_v41 = vadd.f32 %v931_v29, %v789_v40  ;;  %v1083_v42 = vpop.f32.mrb[25].mxu0 }
 0x2ae   : > { %v792_v43 = vpop.f32.mrb[26].mxu0 }
 0x2af   : > { %832 = vst [vmem:[%s1372_s11 + $0x20] sm:$0xff] %v790_v41  ;;  %v793_v44 = vadd.f32 %v931_v29, %v792_v43  ;;  %v1084_v45 = vpop.f32.mrb[27].mxu0 }
 0x2b1   : > { %833 = vst [vmem:[%s1372_s11 + $0x28] sm:$0xff] %v793_v44 }
 0x2b4   : > { %v797_v46 = vpop.f32.mrb[28].mxu0 }
 0x2b5   : > { %v798_v47 = vadd.f32 %v931_v29, %v797_v46  ;;  %v1087_v48 = vpop.f32.mrb[29].mxu0 }
 0x2b6   : > { %v800_v49 = vpop.f32.mrb[30].mxu0 }
 0x2b7   : > { %834 = vst [vmem:[%s1372_s11 + $0x30] sm:$0xff] %v798_v47  ;;  %v801_v50 = vadd.f32 %v931_v29, %v800_v49  ;;  %v1088_v51 = vpop.f32.mrb[31].mxu0 }
 0x2b9   : > { %835 = vst [vmem:[%s1372_s11 + $0x38] sm:$0xff] %v801_v50 }
 0x2bc   : > { %v805_v52 = vpop.f32.mrb[32].mxu0 }
 0x2bd   : > { %v806_v53 = vadd.f32 %v931_v29, %v805_v52  ;;  %v1091_v54 = vpop.f32.mrb[33].mxu0 }
 0x2be   : > { %v808_v55 = vpop.f32.mrb[34].mxu0 }
 0x2bf   : > { %836 = vst [vmem:[%s1372_s11 + $0x40] sm:$0xff] %v806_v53  ;;  %v809_v56 = vadd.f32 %v931_v29, %v808_v55  ;;  %v1092_v57 = vpop.f32.mrb[35].mxu0 }
 0x2c1   : > { %837 = vst [vmem:[%s1372_s11 + $0x48] sm:$0xff] %v809_v56 }
 0x2c4   : > { %v813_v58 = vpop.f32.mrb[36].mxu0 }
 0x2c5   : > { %v814_v59 = vadd.f32 %v931_v29, %v813_v58  ;;  %v1095_v60 = vpop.f32.mrb[37].mxu0 }
 0x2c6   : > { %v816_v61 = vpop.f32.mrb[38].mxu0 }
 0x2c7   : > { %838 = vst [vmem:[%s1372_s11 + $0x50] sm:$0xff] %v814_v59  ;;  %v817_v62 = vadd.f32 %v931_v29, %v816_v61  ;;  %v1096_v63 = vpop.f32.mrb[39].mxu0 }
 0x2c9   : > { %839 = vst [vmem:[%s1372_s11 + $0x58] sm:$0xff] %v817_v62 }
 0x2cc   : > { %v821_v0 = vpop.f32.mrb[40].mxu0 }
 0x2cd   : > { %v822_v2 = vadd.f32 %v931_v29, %v821_v0  ;;  %v1099_v3 = vpop.f32.mrb[41].mxu0 }
 0x2ce   : > { %v824_v4 = vpop.f32.mrb[42].mxu0 }
 0x2cf   : > { %840 = vst [vmem:[%s1372_s11 + $0x60] sm:$0xff] %v822_v2  ;;  %v825_v5 = vadd.f32 %v931_v29, %v824_v4  ;;  %v1100_v6 = vpop.f32.mrb[43].mxu0 }
 0x2d1   : > { %841 = vst [vmem:[%s1372_s11 + $0x68] sm:$0xff] %v825_v5 }
 0x2d2 PF: > { %s17_s24 = sadd.s32 1, %s1146_s24  }
 0x2d3   : > { %p14_p4 = scmp.ge.s32.totalorder %s17_s24, 4  }
 0x2d5   :  { %16 = sbr.rel (!%p14_p4) target bundleno = 1 (0x1), region = 78 }

</bundles_post_ra>
